<compile_context>
chip_gen: v7x
topology: tpu7x:2x2x1
jax: 0.10.0
libtpu: 0.0.40
codegen_flags: <defaults>
</compile_context>

<pallas_src>
import functools

import jax
import jax.numpy as jnp
from jax.experimental import pallas as pl
from jax.experimental.pallas import tpu as pltpu


def _round_up(x, m):
    return ((x + m - 1) // m) * m


# ----------------------------- kernels --------------------------------------


def _feat_kernel(x_ref, w_ref, dinv_ref, y_ref):
    # y0 = D^-1/2 (X @ W1): pre-scaled input to the first aggregation.
    xw = jnp.dot(x_ref[...], w_ref[...], preferred_element_type=jnp.float32)
    y_ref[...] = (xw * dinv_ref[...]).astype(y_ref.dtype)


def _gcn_agg_kernel(a_ref, y_ref, dinv_ref, b_ref, *rest, relu, fuse_next):
    if fuse_next:
        wn_ref, out_ref, acc_ref = rest
    else:
        out_ref, acc_ref = rest

    k = pl.program_id(1)

    @pl.when(k == 0)
    def _():
        acc_ref[...] = jnp.zeros_like(acc_ref)

    # Binary-A tile (bf16) @ pre-scaled activations (bf16), f32 accumulation.
    acc_ref[...] += jnp.dot(a_ref[...], y_ref[...],
                            preferred_element_type=jnp.float32)

    @pl.when(k == pl.num_programs(1) - 1)
    def _():
        dinv = dinv_ref[...]                        # [tn, 1] f32
        h = acc_ref[...] * dinv + b_ref[...]        # output-side D^-1/2 + bias
        if relu:
            h = jnp.maximum(h, 0.0)
        if fuse_next:
            # Fuse the next layer's feature transform and its input-side
            # D^-1/2 so the activation only round-trips HBM once per layer.
            h = jnp.dot(h.astype(jnp.bfloat16), wn_ref[...],
                        preferred_element_type=jnp.float32)
            h = h * dinv
        out_ref[...] = h.astype(out_ref.dtype)


def _pool_linear_kernel(p_ref, h_ref, wl_ref, bl_ref, out_ref, acc_ref):
    i = pl.program_id(0)

    @pl.when(i == 0)
    def _():
        acc_ref[...] = jnp.zeros_like(acc_ref)

    # global_mean_pool as a [G, tn] @ [tn, H] accumulation over row tiles.
    acc_ref[...] += jnp.dot(p_ref[...], h_ref[...],
                            preferred_element_type=jnp.float32)

    @pl.when(i == pl.num_programs(0) - 1)
    def _():
        # dropout(p=0.5) is identity in eval mode.
        # TODO(synk): training-mode dropout would use pltpu.prng_seed/prng_random_bits.
        out_ref[...] = (jnp.dot(acc_ref[...], wl_ref[...],
                                preferred_element_type=jnp.float32)
                        + bl_ref[...])


# --------------------------- pallas_call wrappers ----------------------------


def _feat_transform(x_p, w_p, dinv2d, *, tn):
    n_pad, f_pad = x_p.shape
    h_pad = w_p.shape[1]
    return pl.pallas_call(
        _feat_kernel,
        out_shape=jax.ShapeDtypeStruct((n_pad, h_pad), jnp.bfloat16),
        grid_spec=pltpu.PrefetchScalarGridSpec(
            num_scalar_prefetch=0,
            grid=(n_pad // tn,),
            in_specs=[
                pl.BlockSpec((tn, f_pad), lambda i: (i, 0)),
                pl.BlockSpec((f_pad, h_pad), lambda i: (0, 0)),
                pl.BlockSpec((tn, 1), lambda i: (i, 0)),
            ],
            out_specs=pl.BlockSpec((tn, h_pad), lambda i: (i, 0)),
        ),
        compiler_params=pltpu.CompilerParams(
            dimension_semantics=("parallel",)),
    )(x_p, w_p, dinv2d)


def _gcn_aggregate(a_p, y_p, dinv2d, b_p, w_next, *, relu, fuse_next,
                   out_dtype, tn):
    n_pad = a_p.shape[0]
    h_pad = y_p.shape[1]
    n_tiles = n_pad // tn

    # Scoped-VMEM sizing: double-buffered tiles + the f32 accumulator.
    est = (2 * (tn * tn * 2          # A tile (bf16)
                + tn * h_pad * 2     # activation col-block (bf16)
                + tn * 4 + h_pad * 4  # dinv block + bias
                + h_pad * h_pad * 2  # fused next-layer weight (bf16)
                + tn * h_pad * 4)    # output row-block
           + tn * h_pad * 4)         # accumulator scratch
    vmem_limit = int(min(48 * 2**20, max(4 * est, 8 * 2**20)))

    flops = 2 * n_pad * n_pad * h_pad
    if fuse_next:
        flops += 2 * n_pad * h_pad * h_pad
    bytes_accessed = (a_p.size * 2 + y_p.size * 2
                      + n_pad * h_pad * jnp.dtype(out_dtype).itemsize
                      + n_pad * 4 + h_pad * 4
                      + (h_pad * h_pad * 2 if fuse_next else 0))

    in_specs = [
        pl.BlockSpec((tn, tn), lambda i, k: (i, k)),      # A tile
        pl.BlockSpec((tn, h_pad), lambda i, k: (k, 0)),   # activation col-block
        pl.BlockSpec((tn, 1), lambda i, k: (i, 0)),       # D^-1/2 row-block
        pl.BlockSpec((1, h_pad), lambda i, k: (0, 0)),    # bias
    ]
    args = [a_p, y_p, dinv2d, b_p]
    if fuse_next:
        in_specs.append(pl.BlockSpec((h_pad, h_pad), lambda i, k: (0, 0)))
        args.append(w_next)

    kernel = functools.partial(_gcn_agg_kernel, relu=relu, fuse_next=fuse_next)
    return pl.pallas_call(
        kernel,
        out_shape=jax.ShapeDtypeStruct((n_pad, h_pad), out_dtype),
        grid_spec=pltpu.PrefetchScalarGridSpec(
            num_scalar_prefetch=0,
            grid=(n_tiles, n_tiles),            # reduction (A-column) axis last
            in_specs=in_specs,
            out_specs=pl.BlockSpec((tn, h_pad), lambda i, k: (i, 0)),
            scratch_shapes=[pltpu.VMEM((tn, h_pad), jnp.float32)],
        ),
        compiler_params=pltpu.CompilerParams(
            dimension_semantics=("parallel", "arbitrary"),
            vmem_limit_bytes=vmem_limit,
        ),
        cost_estimate=pl.CostEstimate(
            flops=flops, transcendentals=0, bytes_accessed=bytes_accessed),
    )(*args)


def _pool_linear(p_mat, h3, wl_p, bl_p, *, tn):
    g_pad, n_pad = p_mat.shape
    h_pad = h3.shape[1]
    c_pad = wl_p.shape[1]
    return pl.pallas_call(
        _pool_linear_kernel,
        out_shape=jax.ShapeDtypeStruct((g_pad, c_pad), jnp.float32),
        grid_spec=pltpu.PrefetchScalarGridSpec(
            num_scalar_prefetch=0,
            grid=(n_pad // tn,),
            in_specs=[
                pl.BlockSpec((g_pad, tn), lambda i: (0, i)),
                pl.BlockSpec((tn, h_pad), lambda i: (i, 0)),
                pl.BlockSpec((h_pad, c_pad), lambda i: (0, 0)),
                pl.BlockSpec((1, c_pad), lambda i: (0, 0)),
            ],
            out_specs=pl.BlockSpec((g_pad, c_pad), lambda i: (0, 0)),
            scratch_shapes=[pltpu.VMEM((g_pad, h_pad), jnp.float32)],
        ),
        compiler_params=pltpu.CompilerParams(
            dimension_semantics=("arbitrary",)),
    )(p_mat, h3, wl_p, bl_p)


# ------------------------------ forward pass ---------------------------------


def protein_gcn_forward(x, edge_index, batch, params, num_graphs, *,
                        tile_n=128):
    """x: [N, F] f32, edge_index: [2, E] int32, batch: [N] int32.

    tile_n must be a multiple of 128; raise to 512-1024 for large graphs.
    """
    N, F_in = x.shape
    H = params["w1"].shape[0]          # hidden_channels (w1 is [H, F])
    C = params["wl"].shape[0]          # num_classes     (wl is [C, H])
    G = num_graphs

    n_pad = _round_up(N, tile_n)
    f_pad = _round_up(F_in, 128)
    h_pad = _round_up(H, 128)
    c_pad = _round_up(C, 128)
    g_pad = _round_up(G, 8)

    src, dst = edge_index[0], edge_index[1]

    # --- glue: O(N)+O(E) work plus the unavoidable dense adjacency scatter ---
    # PyG gcn_norm semantics: duplicate edges scatter-add; explicit self loops
    # are replaced by a single weight-1 self loop; deg = in-degree incl. loop.
    w_off = jnp.where(src != dst, 1.0, 0.0).astype(jnp.float32)
    deg = jnp.zeros((n_pad,), jnp.float32).at[dst].add(w_off)
    deg = deg.at[jnp.arange(N)].add(1.0)                      # self loops
    dinv = jnp.where(deg > 0.0, jax.lax.rsqrt(deg), 0.0)      # 0 on padded nodes
    dinv2d = dinv[:, None]                                    # [n_pad, 1]

    a = jnp.zeros((n_pad, n_pad), jnp.float32)
    a = a.at[dst, src].add(w_off)
    a = a.at[jnp.arange(N), jnp.arange(N)].add(1.0)
    a = a.astype(jnp.bfloat16)        # binary A streamed as bf16 tiles

    # Mean-pooling matrix [g_pad, n_pad]; padded nodes match no graph.
    batch_pad = jnp.concatenate(
        [batch.astype(jnp.int32), jnp.full((n_pad - N,), -1, jnp.int32)])
    onehot = (batch_pad[None, :] ==
              jnp.arange(g_pad, dtype=jnp.int32)[:, None]).astype(jnp.float32)
    counts = jnp.maximum(onehot.sum(axis=1, keepdims=True), 1.0)
    p_mat = onehot / counts

    # Pad to lane-aligned shapes, pre-transpose weights to [in, out].
    def pad2(m, r, c):
        return jnp.zeros((r, c), m.dtype).at[:m.shape[0], :m.shape[1]].set(m)

    x_p = pad2(x.astype(jnp.float32), n_pad, f_pad).astype(jnp.bfloat16)
    w1 = pad2(params["w1"].T, f_pad, h_pad).astype(jnp.bfloat16)
    w2 = pad2(params["w2"].T, h_pad, h_pad).astype(jnp.bfloat16)
    w3 = pad2(params["w3"].T, h_pad, h_pad).astype(jnp.bfloat16)
    wl = pad2(params["wl"].T, h_pad, c_pad).astype(jnp.float32)
    b1 = pad2(params["b1"][None, :], 1, h_pad)
    b2 = pad2(params["b2"][None, :], 1, h_pad)
    b3 = pad2(params["b3"][None, :], 1, h_pad)
    bl = pad2(params["bl"][None, :], 1, c_pad)

    tn = tile_n

    # y0 = D^-1/2 (X W1^T)
    y = _feat_transform(x_p, w1, dinv2d, tn=tn)
    # conv1 + relu (+ fused W2 transform), conv2 + relu (+ fused W3 transform)
    y = _gcn_aggregate(a, y, dinv2d, b1, w2, relu=True, fuse_next=True,
                       out_dtype=jnp.bfloat16, tn=tn)
    y = _gcn_aggregate(a, y, dinv2d, b2, w3, relu=True, fuse_next=True,
                       out_dtype=jnp.bfloat16, tn=tn)
    # conv3 (no relu)
    h3 = _gcn_aggregate(a, y, dinv2d, b3, None, relu=False, fuse_next=False,
                        out_dtype=jnp.float32, tn=tn)
    # global_mean_pool + dropout(eval: identity) + final linear
    out = _pool_linear(p_mat, h3, wl, bl, tn=tn)
    return out[:G, :C]


def init_params(key, num_features, hidden, num_classes):
    ks = jax.random.split(key, 4)
    scale = 0.1
    return {
        "w1": scale * jax.random.normal(ks[0], (hidden, num_features), jnp.float32),
        "b1": jnp.zeros((hidden,), jnp.float32),
        "w2": scale * jax.random.normal(ks[1], (hidden, hidden), jnp.float32),
        "b2": jnp.zeros((hidden,), jnp.float32),
        "w3": scale * jax.random.normal(ks[2], (hidden, hidden), jnp.float32),
        "b3": jnp.zeros((hidden,), jnp.float32),
        "wl": scale * jax.random.normal(ks[3], (num_classes, hidden), jnp.float32),
        "bl": jnp.zeros((num_classes,), jnp.float32),
    }


if __name__ == "__main__":
    key = jax.random.PRNGKey(0)
    k_x, k_e, k_p = jax.random.split(key, 3)

    G = 2                 # graphs in the batch
    n_per_graph = 160
    N = G * n_per_graph   # 320 nodes -> N_pad 384, a 3x3 A-tile grid
    F_in = 4              # num_features
    H = 32                # hidden_channels
    C = 3                 # num_classes
    e_per_graph = 5 * n_per_graph   # ~degree-10 after symmetrization

    x = jax.random.normal(k_x, (N, F_in), jnp.float32)

    # random intra-graph edges, then symmetrize
    edges = []
    for g in range(G):
        kg = jax.random.fold_in(k_e, g)
        eg = jax.random.randint(kg, (2, e_per_graph), 0, n_per_graph,
                                jnp.int32) + g * n_per_graph
        edges.append(eg)
    e = jnp.concatenate(edges, axis=1)
    edge_index = jnp.concatenate([e, e[::-1]], axis=1)      # [2, 2*E]

    batch = jnp.repeat(jnp.arange(G, dtype=jnp.int32), n_per_graph)

    params = init_params(k_p, F_in, H, C)

    out = protein_gcn_forward(x, edge_index, batch, params, num_graphs=G)
    out = jax.block_until_ready(out)
    assert out.shape == (G, C) and out.dtype == jnp.float32
    assert bool(jnp.all(jnp.isfinite(out)))
    print("KERNEL_OK")
</pallas_src>

<mosaic_0001>
module attributes {stable_mosaic.version = 11 : i64} {
  func.func @_feat_kernel(%arg0: i32, %arg1: memref<128x128xbf16, #tpu.memory_space<vmem>>, %arg2: memref<128x128xbf16, #tpu.memory_space<vmem>>, %arg3: memref<128x1xf32, #tpu.memory_space<vmem>>, %arg4: memref<128x128xbf16, #tpu.memory_space<vmem>>) attributes {dimension_semantics = [#tpu.dimension_semantics<parallel>], iteration_bounds = array<i64: 3>, scalar_prefetch = 0 : i64, scratch_operands = 0 : i64, tpu.core_type = #tpu.core_type<tc>, window_params = [{transform_indices = @transform_0, window_bounds = array<i64: 128, 128>}, {pipeline_mode = #tpu.pipeline_mode<synchronous>, transform_indices = @transform_1, window_bounds = array<i64: 128, 128>}, {transform_indices = @transform_2, window_bounds = array<i64: 128, 1>}, {transform_indices = @transform_3, window_bounds = array<i64: 128, 128>}]} {
    %c0 = arith.constant 0 : index
    %c0_0 = arith.constant 0 : index
    %0 = vector.load %arg1[%c0, %c0_0] : memref<128x128xbf16, #tpu.memory_space<vmem>>, vector<128x128xbf16>
    %c0_1 = arith.constant 0 : index
    %c0_2 = arith.constant 0 : index
    %1 = vector.load %arg2[%c0_1, %c0_2] : memref<128x128xbf16, #tpu.memory_space<vmem>>, vector<128x128xbf16>
    %cst = arith.constant dense<0.000000e+00> : vector<128x128xf32>
    %2 = tpu.matmul %0, %1, %cst {dimension_numbers = #tpu.dot_dimension_numbers<[1], [0], [0], [1], [0, 0, 1, 1], [], []>} : vector<128x128xbf16>, vector<128x128xbf16>, vector<128x128xf32> -> vector<128x128xf32>
    %c0_3 = arith.constant 0 : index
    %c0_4 = arith.constant 0 : index
    %3 = vector.load %arg3[%c0_3, %c0_4] : memref<128x1xf32, #tpu.memory_space<vmem>>, vector<128x1xf32>
    %4 = vector.broadcast %3 : vector<128x1xf32> to vector<128x128xf32>
    %5 = arith.mulf %2, %4 : vector<128x128xf32>
    %6 = arith.truncf %5 : vector<128x128xf32> to vector<128x128xbf16>
    %c0_5 = arith.constant 0 : index
    %c0_6 = arith.constant 0 : index
    %7 = vector.load %arg4[%c0_5, %c0_6] : memref<128x128xbf16, #tpu.memory_space<vmem>>, vector<128x128xbf16>
    tpu.vector_store %arg4[%c0_5, %c0_6], %6 {strides = array<i32>} : memref<128x128xbf16, #tpu.memory_space<vmem>>, vector<128x128xbf16>,
    return
  }
  func.func @transform_0(%arg0: i32) -> (i32, i32) {
    %c0_i32 = arith.constant 0 : i32
    %c0_i32_0 = arith.constant 0 : i32
    return %arg0, %c0_i32 : i32, i32
  }
  func.func @transform_1(%arg0: i32) -> (i32, i32) {
    %c0_i32 = arith.constant 0 : i32
    %c0_i32_0 = arith.constant 0 : i32
    %c0_i32_1 = arith.constant 0 : i32
    return %c0_i32, %c0_i32_0 : i32, i32
  }
  func.func @transform_2(%arg0: i32) -> (i32, i32) {
    %c0_i32 = arith.constant 0 : i32
    %c0_i32_0 = arith.constant 0 : i32
    return %arg0, %c0_i32 : i32, i32
  }
  func.func @transform_3(%arg0: i32) -> (i32, i32) {
    %c0_i32 = arith.constant 0 : i32
    %c0_i32_0 = arith.constant 0 : i32
    return %arg0, %c0_i32 : i32, i32
  }
}

</mosaic_0001>

<bundles_post_ra>
// kernel: tpu_custom_call.1
= control target key start
LH: loop header
LB: loop body
LE: loop exit
PB: predicated region body
PF: predicated region fallthrough
CT: control target
= control target key end

     0   :  { %8 = vsyncpa [#allocation3], 0  ;;  %s1194_s0 = inlined_call_operand.vmem [shape: bf16[384,128], index: 0, kind: input, shape index: {}]   ;;  %s1195_s1 = inlined_call_operand.vmem [shape: bf16[128,128], index: 1, kind: input, shape index: {}]   ;;  %s1196_s2 = inlined_call_operand.vmem [shape: f32[384,1], index: 2, kind: input, shape index: {}]   ;;  %s1197_s3 = inlined_call_operand.hbm [shape: bf16[384,128], index: 3, kind: output, shape index: {}]  }
   0x1   :  { %10 = vsyncpa [#allocation3 + $0x1], 0  ;;  %s1022_s12 = smov 0   ;;  %s1024_s13 = smov 0  }
   0x2   :  { %s1026_s14 = smov 0   ;;  %s1028_s15 = smov 0  }
   0x3 LB: > { %s1043_s16 = sadd.s32 4294967295, %s996_s15   ;;  %s700_s17 = sadd.s32 4294967294, %s996_s15   ;;  %s996_s15 = sphi %s1028_s15, %s1203_s15   ;;  %s992_s14 = sphi %s1026_s14, %s1202_s14   ;;  %s988_s13 = sphi %s1024_s13, %s1201_s13   ;;  %s984_s12 = sphi %s1022_s12, %s1200_s12  }
   0x4   : > { %s1047_s18 = sadd.s32 1, %s996_s15   ;;  %s96_s19 = sadd.s32 1, %s992_s14 }
   0x5   : > { %s93_s20 = ssub.s32 %s996_s15, %s1047_s18  ;;  %p106_p0 = scmp.ne.s32.totalorder %s992_s14, %s988_s13 }
   0x6   : > { %p94_p1 = scmp.eq.s32.totalorder %s93_s20, 0  ;;  %p107_p2 = scmp.eq.s32.totalorder %s1043_s16, 2 }
   0x7   : > { %p112_p3 = scmp.ne.s32.totalorder %s988_s13, %s984_s12  ;;  %p113_p4 = scmp.eq.s32.totalorder %s700_s17, 2 }
   0x8   : > { %s1058_s21 = scalar_select %p94_p1, %s992_s14, %s96_s19  }
   0x9   : > { %p1060_p5 = por %p107_p2, %p106_p0  ;;  %p1064_p6 = por %p113_p4, %p112_p3 }
   0xa   : > { %p703_p7 = scmp.ge.s32.totalorder %s996_s15, 1  ;;  %p152_p8 = scmp.lt.s32.totalorder %s996_s15, 4 }
   0xc   : > { %p153_p9 = pnand %p703_p7, %p152_p8 }
   0xd   : > { %v918_v0 = vld [vmem:[%s1195_s1] sm:$0xff] (!%p153_p9)   ;;  %s705_s26 = sshll.u32 (!%p153_p9), %s1043_s16, 4  ;;  %v919_v1 = vld [vmem:[%s1195_s1 + $0x8] sm:$0xff] (!%p153_p9)   ;;  %v920_v2 = vld [vmem:[%s1195_s1 + $0x10] sm:$0xff] (!%p153_p9)   ;;  %v998_v3 = vmov (!%p153_p9), 0   ;;  %s999_s19 = smov (!%p153_p9), [#allocation2]  }
   0xe   : > { %156 = sbr.rel (%p153_p9) target bundleno = 288 (0x120), region = 32  ;;  %p182_p10 = scmp.lt.s32.totalorder (!%p153_p9), %s705_s26, 47  ;;  %826 = vmatprep.subr.bf16.mxu0 (!%p153_p9), %v918_v0  ;;  %858 = vmatprep.subr.bf16.mxu1 (!%p153_p9), %v918_v0  ;;  %v921_v4 = vld [vmem:[%s1195_s1 + $0x18] sm:$0xff] (!%p153_p9)   ;;  %v922_v7 = vld [vmem:[%s1195_s1 + $0x20] sm:$0xff] (!%p153_p9)   ;;  %v923_v8 = vld [vmem:[%s1195_s1 + $0x28] sm:$0xff] (!%p153_p9)  }
   0xf   : > { %827 = vmatpush3.bf16.msra.mxu0 (!%p153_p9), %v918_v0  ;;  %866 = vmatpush3.bf16.msra.mxu1 (!%p153_p9), %v918_v0  ;;  %v924_v13 = vld [vmem:[%s1195_s1 + $0x30] sm:$0xff] (!%p153_p9)   ;;  %v925_v16 = vld [vmem:[%s1195_s1 + $0x38] sm:$0xff] (!%p153_p9)   ;;  %s938_s20 = sshll.u32 (!%p153_p9), %s999_s19, 4  ;;  %s939_s20 = int_to_ptr.vmem [resolvable:$false] %s938_s20 }
  0x10   : > { %828 = vmatprep.subr.bf16.mxu0 (!%p153_p9), %v919_v1  ;;  %859 = vmatprep.subr.bf16.mxu1 (!%p153_p9), %v919_v1 }
  0x11   : > { %917 = vset.pattern.permute.xlu1 (!%p153_p9), %v998_v3  ;;  %916 = vset.pattern.permute.xlu0 (!%p153_p9), %v998_v3 }
  0x13   : > { %829 = vmatpush3.bf16.msra.mxu0 (!%p153_p9), %v919_v1  ;;  %867 = vmatpush3.bf16.msra.mxu1 (!%p153_p9), %v919_v1 }
  0x14   : > { %830 = vmatprep.subr.bf16.mxu0 (!%p153_p9), %v920_v2  ;;  %860 = vmatprep.subr.bf16.mxu1 (!%p153_p9), %v920_v2 }
  0x15   : > { %s1205_s26 = smov (!%p182_p10, %s705_s26), 47 }
  0x16   : > { %s706_s4 = sshll.u32 %s1205_s26, 2  ;;  %s708_s10 = sshll.u32 %s1205_s26, 3 }
  0x17   : > { %s1083_s7 = scalar_lea.vmem %s1194_s0, %s706_s4  ;;  %831 = vmatpush3.bf16.msra.mxu0 %v920_v2  ;;  %868 = vmatpush3.bf16.msra.mxu1 %v920_v2  ;;  %s1096_s24 = scalar_lea.vmem %s1196_s2, %s708_s10 }
  0x18   : > { %v926_v5 = vld [vmem:[%s1083_s7] sm:$0xff]   ;;  %832 = vmatprep.subr.bf16.mxu0 %v921_v4  ;;  %861 = vmatprep.subr.bf16.mxu1 %v921_v4  ;;  %v422_v9 = vld [vmem:[%s1096_s24 + $0x10] sm:$0xff]  ;;  %v423_v11 = vld [vmem:[%s1096_s24 + $0x18] sm:$0xff]  ;;  %s178_s4 = sand.u32 1, %s988_s13  }
  0x19   : > { %v927_v6 = vld [vmem:[%s1083_s7 + $0x20] sm:$0xff]   ;;  %842 = vmatprep.mubr.bf16.mxu0 %v926_v5  ;;  %448 = vperm.xlu1 %917, %v422_v9   ;;  %v421_v12 = vld [vmem:[%s1096_s24 + $0x8] sm:$0xff]  ;;  %v427_v17 = vld [vmem:[%s1096_s24 + $0x38] sm:$0xff]  ;;  %s704_s5 = sshll.u32 %s178_s4, 6  ;;  %s1153_s11 = scalar_lea.sflag [#allocation3], %s178_s4 }
  0x1a   : > { %850 = vmatprep.mubr.bf16.mxu1 %v927_v6  ;;  %v420_v10 = vld [vmem:[%s1096_s24] sm:$0xff]  ;;  %v425_v14 = vld [vmem:[%s1096_s24 + $0x28] sm:$0xff]  ;;  %v426_v18 = vld [vmem:[%s1096_s24 + $0x30] sm:$0xff]  ;;  %s1132_s6 = scalar_lea.vmem [#allocation2], %s704_s5 }
  0x1b   : > { %833 = vmatpush3.bf16.msra.mxu0 %v921_v4  ;;  %869 = vmatpush3.bf16.msra.mxu1 %v921_v4  ;;  %v424_v15 = vld [vmem:[%s1096_s24 + $0x20] sm:$0xff]  ;;  %v928_v19 = vld [vmem:[%s1083_s7 + $0x8] sm:$0xff]   ;;  %v930_v23 = vld [vmem:[%s1083_s7 + $0x10] sm:$0xff]   ;;  %s626_s8 = sshll.u32 %s1132_s6, 4  ;;  %s1145_s8 = int_to_ptr.vmem [resolvable:$true] %s626_s8 }
  0x1c   : > { %834 = vmatprep.subr.bf16.mxu0 %v922_v7  ;;  %862 = vmatprep.subr.bf16.mxu1 %v922_v7  ;;  %v929_v20 = vld [vmem:[%s1083_s7 + $0x28] sm:$0xff]   ;;  %v428_v22 = vld [vmem:[%s1096_s24 + $0x40] sm:$0xff]  ;;  %v931_v24 = vld [vmem:[%s1083_s7 + $0x30] sm:$0xff]   ;;  %s934_s17 = scalar_lea.vmem %s1145_s8, 1024  ;;  %p941_p0 = scmp.lt.s32.totalorder %s1145_s8, %s939_s20 }
  0x1d   : > { %438 = vperm.xlu0 %916, %v420_v10   ;;  %453 = vperm.xlu1 %917, %v423_v11   ;;  %v429_v21 = vld [vmem:[%s1096_s24 + $0x48] sm:$0xff]  ;;  %v431_v25 = vld [vmem:[%s1096_s24 + $0x58] sm:$0xff]  ;;  %v430_v26 = vld [vmem:[%s1096_s24 + $0x50] sm:$0xff]  ;;  %p935_p11 = scmp.ne.s32.totalorder %s1145_s8, %s934_s17 }
  0x1e   : > { %v932_v27 = vld [vmem:[%s1083_s7 + $0x18] sm:$0xff]   ;;  %v433_v29 = vld [vmem:[%s1096_s24 + $0x68] sm:$0xff]  ;;  %v432_v30 = vld [vmem:[%s1096_s24 + $0x60] sm:$0xff] }
  0x1f   : > { %835 = vmatpush3.bf16.msra.mxu0 %v922_v7  ;;  %870 = vmatpush3.bf16.msra.mxu1 %v922_v7  ;;  %v933_v28 = vld [vmem:[%s1083_s7 + $0x38] sm:$0xff]   ;;  %v434_v32 = vld [vmem:[%s1096_s24 + $0x70] sm:$0xff]  ;;  %s762_s7 = sshll.u32 %s1043_s16, 10  ;;  %p936_p12 = pnand %p935_p11, %p1060_p5 }
  0x20   : > { %836 = vmatprep.subr.bf16.mxu0 %v923_v8  ;;  %863 = vmatprep.subr.bf16.mxu1 %v923_v8  ;;  %v435_v31 = vld [vmem:[%s1096_s24 + $0x78] sm:$0xff]  ;;  %s1143_s10 = scalar_lea.hbm %s1197_s3, %s762_s7  ;;  %s940_s24 = scalar_lea.vmem %s939_s20, 2048 }
  0x21   : > { %443 = vperm.xlu0 %916, %v421_v12   ;;  %463 = vperm.xlu1 %917, %v425_v14   ;;  %p937_p13 = pneg %p936_p12  ;;  %p942_p1 = scmp.lt.s32.totalorder %s940_s24, %s934_s17 }
  0x23   : > { %837 = vmatpush3.bf16.msra.mxu0 %v923_v8  ;;  %871 = vmatpush3.bf16.msra.mxu1 %v923_v8  ;;  %p943_p2 = por %p942_p1, %p941_p0 }
  0x24   : > { %838 = vmatprep.subr.bf16.mxu0 %v924_v13  ;;  %864 = vmatprep.subr.bf16.mxu1 %v924_v13 }
  0x25   : > { %458 = vperm.xlu0 %916, %v424_v15   ;;  %473 = vperm.xlu1 %917, %v427_v17   ;;  %p944_p3 = pnand %p943_p2, %p937_p13 }
  0x27   : > { %839 = vmatpush3.bf16.msra.mxu0 %v924_v13  ;;  %872 = vmatpush3.bf16.msra.mxu1 %v924_v13 }
  0x28   : > { %840 = vmatprep.subr.bf16.mxu0 %v925_v16  ;;  %865 = vmatprep.subr.bf16.mxu1 %v925_v16 }
  0x29   : > { %468 = vperm.xlu0 %916, %v426_v18   ;;  %483 = vperm.xlu1 %917, %v429_v21  }
  0x2b   : > { %841 = vmatpush3.bf16.msra.mxu0 %v925_v16  ;;  %873 = vmatpush3.bf16.msra.mxu1 %v925_v16 }
  0x2d   : > { %478 = vperm.xlu0 %916, %v428_v22   ;;  %493 = vperm.xlu1 %917, %v431_v25  }
  0x2e   : > { %843 = vmatmul.mubr.bf16.vlgmr.msra.gmra.mrb[0].mxu0 %v928_v19  ;;  %851 = vmatmul.mubr.bf16.vlgmr.msra.gmra.mrb[0].mxu1 %v929_v20 }
  0x2f   : > { %846 = vmatprep.mubr.bf16.mxu0 %v930_v23  ;;  %854 = vmatprep.mubr.bf16.mxu1 %v931_v24 }
  0x31   : > { %488 = vperm.xlu0 %916, %v430_v26   ;;  %503 = vperm.xlu1 %917, %v433_v29  }
  0x35   : > { %498 = vperm.xlu0 %916, %v432_v30   ;;  %513 = vperm.xlu1 %917, %v435_v31  }
  0x36   : > { %847 = vmatmul.mubr.bf16.gmra.mrb[4].mxu0 %v932_v27  ;;  %855 = vmatmul.mubr.bf16.gmra.mrb[4].mxu1 %v933_v28 }
  0x39   : > { %508 = vperm.xlu0 %916, %v434_v32  }
  0x98   : > { %v449_v33 = vpop.permute.xlu1 %448 }
  0x9c   : > { %v439_v34 = vpop.permute.xlu0 %438  ;;  %v454_v35 = vpop.permute.xlu1 %453 }
  0xa0   : > { %v444_v36 = vpop.permute.xlu0 %443  ;;  %v464_v37 = vpop.permute.xlu1 %463 }
  0xa4   : > { %v459_v38 = vpop.permute.xlu0 %458  ;;  %v474_v39 = vpop.permute.xlu1 %473 }
  0xa8   : > { %v469_v40 = vpop.permute.xlu0 %468  ;;  %v484_v41 = vpop.permute.xlu1 %483 }
  0xac   : > { %v479_v42 = vpop.permute.xlu0 %478  ;;  %v494_v43 = vpop.permute.xlu1 %493 }
  0xb0   : > { %v489_v44 = vpop.permute.xlu0 %488  ;;  %v504_v45 = vpop.permute.xlu1 %503 }
  0xb4   : > { %v499_v46 = vpop.permute.xlu0 %498  ;;  %v514_v3 = vpop.permute.xlu1 %513 }
  0xb8   : > { %v509_v4 = vpop.permute.xlu0 %508 }
 0x101   : > { %v844_v47 = vpop.f32.mrb[0].mxu0  ;;  %v852_v48 = vpop.f32.mrb[0].mxu1 }
 0x102   : > { %v357_v49 = vpop.f32.mrb[1].mxu0  ;;  %v389_v50 = vpop.f32.mrb[1].mxu1  ;;  %v518_v53 = vmul.f32 %v844_v47, %v449_v33  ;;  %v526_v54 = vmul.f32 %v852_v48, %v489_v44 }
 0x103   : > { %v845_v51 = vpop.f32.mrb[2].mxu0  ;;  %v853_v52 = vpop.f32.mrb[2].mxu1  ;;  %v516_v59 = vmul.f32 %v439_v34, %v357_v49  ;;  %v524_v60 = vmul.f32 %v479_v42, %v389_v50 }
 0x104   : > { %v519_v55 = vmul.f32 %v845_v51, %v454_v35  ;;  %v527_v56 = vmul.f32 %v853_v52, %v494_v43  ;;  %v360_v57 = vpop.f32.mrb[3].mxu0  ;;  %v392_v58 = vpop.f32.mrb[3].mxu1 }
 0x105   : > { %v517_v61 = vmul.f32 %v444_v36, %v360_v57  ;;  %v525_v62 = vmul.f32 %v484_v41, %v392_v58 }
 0x106   : > { %v771_v63 = vpack.c.bf16 %v519_v55, %v518_v53  ;;  %v791_v0 = vpack.c.bf16 %v527_v56, %v526_v54 }
 0x107   : > { %v766_v1 = vpack.c.bf16 %v517_v61, %v516_v59  ;;  %v786_v2 = vpack.c.bf16 %v525_v62, %v524_v60 }
 0x108   : > { %803 = vst [vmem:[%s1132_s6 + $0x8] sm:$0xff] %v771_v63   ;;  %807 = vst [vmem:[%s1132_s6 + $0x28] sm:$0xff] %v791_v0  }
 0x109   : > { %767 = vst [vmem:[%s1132_s6] sm:$0xff] %v766_v1   ;;  %806 = vst [vmem:[%s1132_s6 + $0x20] sm:$0xff] %v786_v2   ;;  %v848_v5 = vpop.f32.mrb[4].mxu0  ;;  %v856_v6 = vpop.f32.mrb[4].mxu1 }
 0x10a   : > { %v373_v7 = vpop.f32.mrb[5].mxu0  ;;  %v405_v8 = vpop.f32.mrb[5].mxu1  ;;  %v522_v11 = vmul.f32 %v848_v5, %v469_v40  ;;  %v530_v12 = vmul.f32 %v856_v6, %v509_v4 }
 0x10b   : > { %v849_v9 = vpop.f32.mrb[6].mxu0  ;;  %v857_v10 = vpop.f32.mrb[6].mxu1  ;;  %v520_v17 = vmul.f32 %v459_v38, %v373_v7  ;;  %v528_v18 = vmul.f32 %v499_v46, %v405_v8 }
 0x10c   : > { %v523_v13 = vmul.f32 %v849_v9, %v474_v39  ;;  %v531_v14 = vmul.f32 %v857_v10, %v514_v3  ;;  %v376_v15 = vpop.f32.mrb[7].mxu0  ;;  %v408_v16 = vpop.f32.mrb[7].mxu1 }
 0x10d   : > { %v521_v19 = vmul.f32 %v464_v37, %v376_v15  ;;  %v529_v20 = vmul.f32 %v504_v45, %v408_v16 }
 0x10e   : > { %v781_v21 = vpack.c.bf16 %v523_v13, %v522_v11  ;;  %v801_v22 = vpack.c.bf16 %v531_v14, %v530_v12 }
 0x10f   : > { %v776_v23 = vpack.c.bf16 %v521_v19, %v520_v17  ;;  %v796_v24 = vpack.c.bf16 %v529_v20, %v528_v18 }
 0x110   : > { %805 = vst [vmem:[%s1132_s6 + $0x18] sm:$0xff] %v781_v21   ;;  %809 = vst [vmem:[%s1132_s6 + $0x38] sm:$0xff] %v801_v22  }
 0x111   : > { %804 = vst [vmem:[%s1132_s6 + $0x10] sm:$0xff] %v776_v23   ;;  %808 = vst [vmem:[%s1132_s6 + $0x30] sm:$0xff] %v796_v24  }
 0x112   : > { %947 = shalt.err (!%p944_p3)
}
 0x113   : > { %s948_s25 = scalar_lea.hbm %s1143_s10, 1024  ;;  %s952_s28 = scalar_lea.hbm %s1197_s3, 3072 }
 0x114   : > { %p949_p4 = scmp.ne.s32.totalorder %s1143_s10, %s948_s25  ;;  %p953_p9 = scmp.lt.u32.totalorder %s1143_s10, %s1197_s3 }
 0x115   : > { %p954_p10 = scmp.lt.u32.totalorder %s952_s28, %s948_s25  ;;  %p956_p12 = scmp.lt.u32.totalorder %s948_s25, %s1143_s10 }
 0x116   : > { %p950_p7 = pnand %p949_p4, %p1060_p5 }
 0x117   : > { %p955_p11 = por %p954_p10, %p953_p9 }
 0x118   : > { %p951_p8 = pneg %p950_p7 }
 0x119   : > { %p957_p13 = por %p956_p12, %p955_p11 }
 0x11b   : > { %p958_p0 = pnand %p957_p13, %p951_p8 }
 0x11d   : > { %961 = shalt.err (!%p958_p0)
}
 0x11e   : > { %s1000_s4 = smov 64   ;;  %s1001_s5 = smov 4  }
 0x11f   : > { %874 = dma.vmem_to_hbm [thread:$0]  (%p1060_p5), %s1145_s8, 1024, %s1143_s10, %s1153_s11, %s1000_s4, %s1000_s4, %s1001_s5  }
 0x120 PF: > { %p880_p1 = scmp.ge.s32.totalorder %s996_s15, 2  ;;  %s641_s6 = sand.u32 1, %s984_s12  }
 0x121   : > { %s642_s7 = scalar_lea.sflag [#allocation3], %s641_s6 }
 0x122   : > { %p877_p2 = pnand %p880_p1, %p1064_p6 }
 0x124   : > { %979 = dma.done.wait (!%p877_p2), %s642_s7, 1024  }
 0x125   : > { %981 = vsyncadd (!%p877_p2), %s642_s7, 4294966272  ;;  %p13_p3 = scmp.ge.s32.totalorder %s1047_s18, 5   ;;  %s1200_s12 = smov %s988_s13 }
 0x126   : > { %s1201_s13 = smov %s992_s14  ;;  %s1202_s14 = smov %s1058_s21 }
 0x127   : > { %s1203_s15 = smov %s1047_s18  ;;  %15 = sbr.rel (!%p13_p3) target bundleno = 3 (0x3), region = 70 }
 0x12e   :  { %647 = vsyncpa [#allocation3], 1 }
 0x12f   :  { %649 = vsyncpa [#allocation3 + $0x1], 1 }

</bundles_post_ra>
